<compile_context>
chip_gen: v7x
topology: tpu7x:2x2x1
jax: 0.10.0
libtpu: 0.0.40
codegen_flags: <defaults>
</compile_context>

<pallas_src>
import functools

import jax
import jax.numpy as jnp
from jax.experimental import pallas as pl
from jax.experimental.pallas import tpu as pltpu


def _ceil_div(a, b):
    return -(-a // b)


def _round_down(a, b):
    return (a // b) * b


def _vmem_capacity_bytes():
    try:
        return int(pltpu.get_tpu_info().vmem_capacity_bytes)
    except Exception:
        # Conservative fallback: v7x per-TensorCore VMEM (64 MiB).
        return 64 * 1024 * 1024


# ---------------------------------------------------------------------------
# Single-pass kernel: the whole spatial extent (H*W) is resident per row block.
# ---------------------------------------------------------------------------
def _frn_kernel(x_ref, tau_ref, beta_ref, gamma_ref, o_ref, *, eps, hw):
    xf = x_ref[...].astype(jnp.float32)
    # Per-(b, c) mean over the full (un-padded) spatial extent.  Matches the
    # reference module exactly: mean of x (NOT mean of x^2).
    nu2 = jnp.sum(xf, axis=-1, keepdims=True) * (1.0 / hw)
    inv = jax.lax.rsqrt(nu2 + eps)  # EUP transcendental, one per row
    if o_ref.dtype == jnp.float32:
        xn = xf * inv
    else:
        # Mem-bound kernel: keep the elementwise tail in the native (e.g. bf16)
        # dtype to halve vreg footprint; mean/rsqrt stay in f32.  Rounding
        # differs slightly from a pure native-dtype reference (documented).
        xn = (xf * inv).astype(o_ref.dtype)
    o_ref[...] = jnp.maximum(gamma_ref[...] * xn + beta_ref[...],
                             tau_ref[...]).astype(o_ref.dtype)


# ---------------------------------------------------------------------------
# Two-pass fallback for huge H*W (or forced for testing):
#   pass 1: per-row sums of x   (1 big stream)
#   pass 2: apply normalization (4 big reads + 1 big write + tiny sums read)
# ---------------------------------------------------------------------------
def _frn_sum_kernel(x_ref, sum_ref, *, hw, hw_tile, mask_tail):
    k = pl.program_id(1)

    @pl.when(k == 0)
    def _():
        sum_ref[...] = jnp.zeros_like(sum_ref)

    xf = x_ref[...].astype(jnp.float32)
    if mask_tail:
        # The last HW block extends past the logical extent: zero those lanes so
        # they do not contaminate the per-row sum.
        col = k * hw_tile + jax.lax.broadcasted_iota(jnp.int32, xf.shape, 1)
        xf = jnp.where(col < hw, xf, 0.0)
    sum_ref[...] += jnp.sum(xf, axis=-1, keepdims=True)


def _frn_apply_kernel(sum_ref, x_ref, tau_ref, beta_ref, gamma_ref, o_ref, *,
                      eps, hw):
    nu2 = sum_ref[...] * (1.0 / hw)
    inv = jax.lax.rsqrt(nu2 + eps)
    xf = x_ref[...].astype(jnp.float32)
    if o_ref.dtype == jnp.float32:
        xn = xf * inv
    else:
        xn = (xf * inv).astype(o_ref.dtype)
    o_ref[...] = jnp.maximum(gamma_ref[...] * xn + beta_ref[...],
                             tau_ref[...]).astype(o_ref.dtype)


# ---------------------------------------------------------------------------
# Wrappers
# ---------------------------------------------------------------------------
def _frn_single_pass(x2, tau2, beta2, gamma2, eps, BC, HW, dtype, dbytes,
                     row_align, rb_cap):
    # Row block: each per-array block stays within the VMEM budget, but keep
    # >= ~8 grid steps when BC allows (>= 3-4 per TensorCore on v7x) so each
    # core still double-buffers internally.
    min_steps = 8
    rb_steps = max(row_align, _round_down(_ceil_div(BC, min_steps), row_align))
    rb = max(row_align, min(_round_down(rb_cap, row_align), rb_steps))
    if rb >= BC:
        rb = BC  # full-extent block dim bypasses the 8-row divisibility rule

    grid = (pl.cdiv(BC, rb),)

    # Last dim == full HW: bypasses the 128-lane divisibility rule, so no
    # wrapper-side pad/slice HBM round-trips.  A partial last row block is
    # handled by Pallas (reads of OOB rows are garbage but per-row stats keep
    # them isolated; their writes are masked/dropped).
    spec = pl.BlockSpec((rb, HW), lambda i: (i, 0))

    total_vmem = 5 * 2 * rb * HW * dbytes  # 5 streams, double-buffered
    vmem_limit = int(total_vmem + (16 << 20))

    n = BC * HW
    cost = pl.CostEstimate(
        flops=5 * n,                       # sum + scale + affine + max (approx)
        transcendentals=BC,                # one rsqrt per (b, c) row
        bytes_accessed=5 * n * dbytes,     # true (unpadded) traffic
    )

    return pl.pallas_call(
        functools.partial(_frn_kernel, eps=float(eps), hw=float(HW)),
        out_shape=jax.ShapeDtypeStruct((BC, HW), dtype),
        grid_spec=pltpu.PrefetchScalarGridSpec(
            num_scalar_prefetch=0,
            grid=grid,
            in_specs=[spec, spec, spec, spec],
            out_specs=spec,
        ),
        compiler_params=pltpu.CompilerParams(
            dimension_semantics=("parallel",),
            vmem_limit_bytes=vmem_limit,
        ),
        cost_estimate=cost,
    )(x2, tau2, beta2, gamma2)


def _frn_two_pass(x2, tau2, beta2, gamma2, eps, BC, HW, dtype, dbytes,
                  row_align, budget, hw_block):
    rb = min(row_align, BC)

    if hw_block is None:
        # Size the HW tile so pass 2 (5 double-buffered streams) fits the budget.
        hw_tile = _round_down(budget // (10 * rb * dbytes), 128)
        hw_tile = max(hw_tile, 128)
    else:
        hw_tile = int(hw_block)
    if hw_tile >= HW:
        hw_tile = HW  # full-extent dim bypasses the 128-lane rule
    else:
        assert hw_tile % 128 == 0, "hw_block must be a multiple of 128"

    nrows = pl.cdiv(BC, rb)
    nk = pl.cdiv(HW, hw_tile)
    mask_tail = (HW % hw_tile) != 0

    big_spec = pl.BlockSpec((rb, hw_tile), lambda i, k: (i, k))
    sum_spec = pl.BlockSpec((rb, 1), lambda i, k: (i, 0))

    n = BC * HW

    # ---- pass 1: per-row sums -------------------------------------------
    p1_vmem = 2 * rb * hw_tile * dbytes + 2 * rb * 4
    sums = pl.pallas_call(
        functools.partial(_frn_sum_kernel, hw=HW, hw_tile=hw_tile,
                          mask_tail=mask_tail),
        out_shape=jax.ShapeDtypeStruct((BC, 1), jnp.float32),
        grid_spec=pltpu.PrefetchScalarGridSpec(
            num_scalar_prefetch=0,
            grid=(nrows, nk),
            in_specs=[big_spec],
            out_specs=sum_spec,
        ),
        compiler_params=pltpu.CompilerParams(
            dimension_semantics=("parallel", "arbitrary"),
            vmem_limit_bytes=int(p1_vmem + (16 << 20)),
        ),
        cost_estimate=pl.CostEstimate(
            flops=n, transcendentals=0,
            bytes_accessed=n * dbytes + BC * 4),
    )(x2)

    # ---- pass 2: apply ----------------------------------------------------
    p2_vmem = 5 * 2 * rb * hw_tile * dbytes + 2 * rb * 4
    out2 = pl.pallas_call(
        functools.partial(_frn_apply_kernel, eps=float(eps), hw=float(HW)),
        out_shape=jax.ShapeDtypeStruct((BC, HW), dtype),
        grid_spec=pltpu.PrefetchScalarGridSpec(
            num_scalar_prefetch=0,
            grid=(nrows, nk),
            in_specs=[sum_spec, big_spec, big_spec, big_spec, big_spec],
            out_specs=big_spec,
        ),
        compiler_params=pltpu.CompilerParams(
            dimension_semantics=("parallel", "parallel"),
            vmem_limit_bytes=int(p2_vmem + (16 << 20)),
        ),
        cost_estimate=pl.CostEstimate(
            flops=4 * n, transcendentals=BC,
            bytes_accessed=5 * n * dbytes + BC * 4),
    )(sums, x2, tau2, beta2, gamma2)
    return out2


def frn_forward(x, tau, beta, gamma, eps=1e-6, *,
                force_two_pass=False, hw_block=None):
    """x, tau, beta, gamma: (B, C, H, W). Returns (B, C, H, W)."""
    B, C, H, W = x.shape
    assert tau.shape == x.shape and beta.shape == x.shape and gamma.shape == x.shape
    # TODO(synk): if tau/beta/gamma were per-channel (1, C, 1, 1) as in canonical
    # FRN, streaming them as small (BC, 1) vectors would cut HBM traffic ~2.5x;
    # the module as written uses full (B, C, H, W) parameters, so we stream them.

    BC, HW = B * C, H * W
    dtype = x.dtype
    dbytes = jnp.dtype(dtype).itemsize
    row_align = 8 if dbytes >= 4 else 16

    # VMEM budget gated by generation: ~40% of physical VMEM, capped at 40 MiB
    # (v7x has only 64 MiB per TensorCore; v5e/v6e have 128 MiB).
    vmem_cap = _vmem_capacity_bytes()
    budget = min(int(0.40 * vmem_cap), 40 << 20)
    per_block_budget = budget // 10  # 5 streams (4 in + 1 out), double-buffered

    # Free, contiguous reshape: (B, C, H, W) -> (B*C, H*W).
    x2 = x.reshape(BC, HW)
    tau2 = tau.reshape(BC, HW)
    beta2 = beta.reshape(BC, HW)
    gamma2 = gamma.reshape(BC, HW)

    row_bytes = HW * dbytes
    rb_cap = per_block_budget // row_bytes        # rows per block that fit budget
    min_rows = min(row_align, BC)

    if (not force_two_pass) and rb_cap >= min_rows:
        out2 = _frn_single_pass(x2, tau2, beta2, gamma2, eps, BC, HW, dtype,
                                dbytes, row_align, rb_cap)
    else:
        out2 = _frn_two_pass(x2, tau2, beta2, gamma2, eps, BC, HW, dtype,
                             dbytes, row_align, budget, hw_block)
    return out2.reshape(B, C, H, W)


def frn_reference(x, tau, beta, gamma, eps=1e-6):
    nu2 = jnp.mean(x, axis=(2, 3), keepdims=True)
    xn = x * jax.lax.rsqrt(nu2 + eps)
    return jnp.maximum(gamma * xn + beta, tau)


if __name__ == "__main__":
    key = jax.random.PRNGKey(0)

    def make_inputs(k, shape):
        k = jax.random.split(k, 4)
        # shift x so mean(x) + eps stays positive (the module uses mean(x), not
        # mean(x^2), so rsqrt would NaN on zero-mean data)
        x = jax.random.normal(k[0], shape, dtype=jnp.float32) + 1.5
        tau = jax.random.normal(k[1], shape, dtype=jnp.float32)
        beta = jax.random.normal(k[2], shape, dtype=jnp.float32)
        gamma = jax.random.normal(k[3], shape, dtype=jnp.float32)
        return x, tau, beta, gamma

    keys = jax.random.split(key, 4)

    # 1) aligned shapes: single-pass, full-array block
    x, tau, beta, gamma = make_inputs(keys[0], (2, 4, 16, 16))
    out = jax.block_until_ready(frn_forward(x, tau, beta, gamma, eps=1e-6))
    ref = frn_reference(x, tau, beta, gamma, eps=1e-6)
    assert out.shape == (2, 4, 16, 16)
    assert jnp.allclose(out, ref, atol=1e-5, rtol=1e-5), "mismatch (aligned)"

    # 2) unaligned H*W (not a multiple of 128): single-pass, full-HW block,
    #    no wrapper padding
    x, tau, beta, gamma = make_inputs(keys[1], (2, 3, 7, 7))
    out = jax.block_until_ready(frn_forward(x, tau, beta, gamma, eps=1e-6))
    ref = frn_reference(x, tau, beta, gamma, eps=1e-6)
    assert jnp.allclose(out, ref, atol=1e-5, rtol=1e-5), "mismatch (unaligned HW)"

    # 3) BC not a multiple of the row block: exercises the masked partial last
    #    row block (garbage OOB rows never contaminate valid rows)
    x, tau, beta, gamma = make_inputs(keys[2], (2, 5, 16, 16))   # BC=10, rb=8
    out = jax.block_until_ready(frn_forward(x, tau, beta, gamma, eps=1e-6))
    ref = frn_reference(x, tau, beta, gamma, eps=1e-6)
    assert jnp.allclose(out, ref, atol=1e-5, rtol=1e-5), "mismatch (partial rows)"

    # 4) two-pass (huge-H*W fallback), forced at a small shape with an HW tile
    #    that does not divide H*W -> exercises the lane-masked partial sum
    x, tau, beta, gamma = make_inputs(keys[3], (2, 3, 10, 13))   # HW=130
    out = jax.block_until_ready(
        frn_forward(x, tau, beta, gamma, eps=1e-6,
                    force_two_pass=True, hw_block=128))
    ref = frn_reference(x, tau, beta, gamma, eps=1e-6)
    assert jnp.allclose(out, ref, atol=1e-5, rtol=1e-5), "mismatch (two-pass)"

    print("KERNEL_OK")
</pallas_src>

<mosaic_0001>
module attributes {stable_mosaic.version = 11 : i64} {
  func.func @_frn_kernel(%arg0: i32, %arg1: memref<8x256xf32, #tpu.memory_space<vmem>>, %arg2: memref<8x256xf32, #tpu.memory_space<vmem>>, %arg3: memref<8x256xf32, #tpu.memory_space<vmem>>, %arg4: memref<8x256xf32, #tpu.memory_space<vmem>>, %arg5: memref<8x256xf32, #tpu.memory_space<vmem>>) attributes {dimension_semantics = [#tpu.dimension_semantics<parallel>], iteration_bounds = array<i64: 1>, scalar_prefetch = 0 : i64, scratch_operands = 0 : i64, tpu.core_type = #tpu.core_type<tc>, window_params = [{transform_indices = @transform_0, window_bounds = array<i64: 8, 256>}, {transform_indices = @transform_1, window_bounds = array<i64: 8, 256>}, {transform_indices = @transform_2, window_bounds = array<i64: 8, 256>}, {transform_indices = @transform_3, window_bounds = array<i64: 8, 256>}, {transform_indices = @transform_4, window_bounds = array<i64: 8, 256>}]} {
    %c0 = arith.constant 0 : index
    %c0_0 = arith.constant 0 : index
    %0 = vector.load %arg1[%c0, %c0_0] : memref<8x256xf32, #tpu.memory_space<vmem>>, vector<8x256xf32>
    %cst = arith.constant dense<0.000000e+00> : vector<8xf32>
    %1 = vector.multi_reduction <add>, %0, %cst [1] : vector<8x256xf32> to vector<8xf32>
    %2 = vector.shape_cast %1 : vector<8xf32> to vector<8x1xf32>
    %cst_1 = arith.constant 3.906250e-03 : f32
    %3 = vector.broadcast %cst_1 : f32 to vector<8x1xf32>
    %4 = arith.mulf %2, %3 : vector<8x1xf32>
    %cst_2 = arith.constant 9.99999997E-7 : f32
    %5 = vector.broadcast %cst_2 : f32 to vector<8x1xf32>
    %6 = arith.addf %4, %5 : vector<8x1xf32>
    %7 = math.rsqrt %6 : vector<8x1xf32>
    %8 = vector.broadcast %7 : vector<8x1xf32> to vector<8x256xf32>
    %9 = arith.mulf %0, %8 : vector<8x256xf32>
    %c0_3 = arith.constant 0 : index
    %c0_4 = arith.constant 0 : index
    %10 = vector.load %arg4[%c0_3, %c0_4] : memref<8x256xf32, #tpu.memory_space<vmem>>, vector<8x256xf32>
    %11 = arith.mulf %10, %9 : vector<8x256xf32>
    %c0_5 = arith.constant 0 : index
    %c0_6 = arith.constant 0 : index
    %12 = vector.load %arg3[%c0_5, %c0_6] : memref<8x256xf32, #tpu.memory_space<vmem>>, vector<8x256xf32>
    %13 = arith.addf %11, %12 : vector<8x256xf32>
    %c0_7 = arith.constant 0 : index
    %c0_8 = arith.constant 0 : index
    %14 = vector.load %arg2[%c0_7, %c0_8] : memref<8x256xf32, #tpu.memory_space<vmem>>, vector<8x256xf32>
    %15 = arith.maximumf %13, %14 : vector<8x256xf32>
    %c0_9 = arith.constant 0 : index
    %c0_10 = arith.constant 0 : index
    %16 = vector.load %arg5[%c0_9, %c0_10] : memref<8x256xf32, #tpu.memory_space<vmem>>, vector<8x256xf32>
    tpu.vector_store %arg5[%c0_9, %c0_10], %15 {strides = array<i32>} : memref<8x256xf32, #tpu.memory_space<vmem>>, vector<8x256xf32>,
    return
  }
  func.func @transform_0(%arg0: i32) -> (i32, i32) {
    %c0_i32 = arith.constant 0 : i32
    %c0_i32_0 = arith.constant 0 : i32
    return %arg0, %c0_i32 : i32, i32
  }
  func.func @transform_1(%arg0: i32) -> (i32, i32) {
    %c0_i32 = arith.constant 0 : i32
    %c0_i32_0 = arith.constant 0 : i32
    return %arg0, %c0_i32 : i32, i32
  }
  func.func @transform_2(%arg0: i32) -> (i32, i32) {
    %c0_i32 = arith.constant 0 : i32
    %c0_i32_0 = arith.constant 0 : i32
    return %arg0, %c0_i32 : i32, i32
  }
  func.func @transform_3(%arg0: i32) -> (i32, i32) {
    %c0_i32 = arith.constant 0 : i32
    %c0_i32_0 = arith.constant 0 : i32
    return %arg0, %c0_i32 : i32, i32
  }
  func.func @transform_4(%arg0: i32) -> (i32, i32) {
    %c0_i32 = arith.constant 0 : i32
    %c0_i32_0 = arith.constant 0 : i32
    return %arg0, %c0_i32 : i32, i32
  }
}

</mosaic_0001>

<bundles_post_ra>
// kernel: tpu_custom_call.1
= control target key start
LH: loop header
LB: loop body
LE: loop exit
PB: predicated region body
PF: predicated region fallthrough
CT: control target
= control target key end

     0   :  { %9 = vsyncpa [#allocation3], 0  ;;  %s321_s0 = inlined_call_operand.hbm [shape: f32[8,256], index: 0, kind: input, shape index: {}]   ;;  %s322_s1 = inlined_call_operand.hbm [shape: f32[8,256], index: 1, kind: input, shape index: {}]   ;;  %s323_s2 = inlined_call_operand.hbm [shape: f32[8,256], index: 2, kind: input, shape index: {}]   ;;  %s324_s3 = inlined_call_operand.hbm [shape: f32[8,256], index: 3, kind: input, shape index: {}]   ;;  %s325_s4 = inlined_call_operand.hbm [shape: f32[8,256], index: 4, kind: output, shape index: {}]  }
   0x1   :  { %10 = vsyncpa [#allocation6], 0 }
   0x2   :  { %11 = vsyncpa [#allocation9], 0 }
   0x3   :  { %12 = vsyncpa [#allocation4], 0  ;;  %s231_s15 = smov [#allocation5]   ;;  %s232_s17 = smov [#allocation2]  }
   0x4   :  { %s29_s16 = sshll.u32 %s231_s15, 4  ;;  %s19_s18 = sshll.u32 %s232_s17, 4  ;;  %s30_s16 = int_to_ptr.vmem [resolvable:$true] %s29_s16  ;;  %s20_s18 = int_to_ptr.vmem [resolvable:$true] %s19_s18 }
   0x5   :  { %s113_s21 = scalar_lea.hbm %s322_s1, 256 }
   0x6   :  { %p114_p0 = scmp.ne.s32.totalorder %s322_s1, %s113_s21  ;;  %p117_p1 = scmp.lt.u32.totalorder %s113_s21, %s322_s1 }
   0x8   :  { %p119_p2 = pnand %p117_p1, %p114_p0 }
   0xa   :  { %122 = shalt.err (!%p119_p2)
}
   0xb   :  { %s123_s26 = scalar_lea.vmem %s30_s16, 256  ;;  %p128_p4 = scmp.lt.s32.totalorder %s30_s16, %s30_s16 }
   0xc   :  { %p124_p3 = scmp.ne.s32.totalorder %s30_s16, %s123_s26  ;;  %p129_p5 = scmp.lt.s32.totalorder %s123_s26, %s123_s26 }
   0xe   :  { %p130_p6 = por %p129_p5, %p128_p4 }
  0x10   :  { %p131_p7 = pnand %p130_p6, %p124_p3 }
  0x12   :  { %134 = shalt.err (!%p131_p7)
}
  0x13   :  { %32 = dma.hbm_to_vmem [thread:$0]  %s322_s1, 256, %s30_s16, [#allocation6]  }
  0x14   :  { %s135_s5 = scalar_lea.hbm %s321_s0, 256 }
  0x15   :  { %p136_p8 = scmp.ne.s32.totalorder %s321_s0, %s135_s5  ;;  %p139_p9 = scmp.lt.u32.totalorder %s135_s5, %s321_s0 }
  0x17   :  { %p141_p10 = pnand %p139_p9, %p136_p8 }
  0x19   :  { %144 = shalt.err (!%p141_p10)
}
  0x1a   :  { %s145_s10 = scalar_lea.vmem %s20_s18, 256  ;;  %p150_p12 = scmp.lt.s32.totalorder %s20_s18, %s20_s18 }
  0x1b   :  { %p146_p11 = scmp.ne.s32.totalorder %s20_s18, %s145_s10  ;;  %p151_p13 = scmp.lt.s32.totalorder %s145_s10, %s145_s10 }
  0x1d   :  { %p152_p0 = por %p151_p13, %p150_p12 }
  0x1f   :  { %p153_p1 = pnand %p152_p0, %p146_p11 }
  0x21   :  { %156 = shalt.err (!%p153_p1)
}
  0x22   :  { %22 = dma.hbm_to_vmem [thread:$0]  %s321_s0, 256, %s20_s18, [#allocation3]  }
  0x23   :  { %s233_s12 = smov [#allocation7]   ;;  %s234_s14 = smov [#allocation8]  }
  0x24   :  { %s39_s13 = sshll.u32 %s233_s12, 4  ;;  %s49_s15 = sshll.u32 %s234_s14, 4  ;;  %s40_s13 = int_to_ptr.vmem [resolvable:$true] %s39_s13  ;;  %s50_s15 = int_to_ptr.vmem [resolvable:$true] %s49_s15 }
  0x25   :  { %s157_s19 = scalar_lea.hbm %s323_s2, 256 }
  0x26   :  { %p158_p2 = scmp.ne.s32.totalorder %s323_s2, %s157_s19  ;;  %p161_p3 = scmp.lt.u32.totalorder %s157_s19, %s323_s2 }
  0x28   :  { %p163_p4 = pnand %p161_p3, %p158_p2 }
  0x2a   :  { %166 = shalt.err (!%p163_p4)
}
  0x2b   :  { %s167_s0 = scalar_lea.vmem %s40_s13, 256  ;;  %p172_p6 = scmp.lt.s32.totalorder %s40_s13, %s40_s13 }
  0x2c   :  { %p168_p5 = scmp.ne.s32.totalorder %s40_s13, %s167_s0  ;;  %p173_p7 = scmp.lt.s32.totalorder %s167_s0, %s167_s0 }
  0x2e   :  { %p174_p8 = por %p173_p7, %p172_p6 }
  0x30   :  { %p175_p9 = pnand %p174_p8, %p168_p5 }
  0x32   :  { %178 = shalt.err (!%p175_p9)
}
  0x33   :  { %42 = dma.hbm_to_vmem [thread:$0]  %s323_s2, 256, %s40_s13, [#allocation6]  }
  0x34   :  { %s179_s27 = scalar_lea.hbm %s324_s3, 256 }
  0x35   :  { %p180_p10 = scmp.ne.s32.totalorder %s324_s3, %s179_s27  ;;  %p183_p11 = scmp.lt.u32.totalorder %s179_s27, %s324_s3 }
  0x37   :  { %p185_p12 = pnand %p183_p11, %p180_p10 }
  0x39   :  { %188 = shalt.err (!%p185_p12)
}
  0x3a   :  { %s189_s6 = scalar_lea.vmem %s50_s15, 256  ;;  %p194_p0 = scmp.lt.s32.totalorder %s50_s15, %s50_s15 }
  0x3b   :  { %p190_p13 = scmp.ne.s32.totalorder %s50_s15, %s189_s6  ;;  %p195_p1 = scmp.lt.s32.totalorder %s189_s6, %s189_s6 }
  0x3d   :  { %p196_p2 = por %p195_p1, %p194_p0 }
  0x3f   :  { %p197_p3 = pnand %p196_p2, %p190_p13 }
  0x41   :  { %200 = shalt.err (!%p197_p3)
}
  0x42   :  { %52 = dma.hbm_to_vmem [thread:$0]  %s324_s3, 256, %s50_s15, [#allocation9]  }
  0x43   :  { %223 = dma.done.wait [#allocation3], 256  }
  0x44   :  { %224 = vsyncadd [#allocation3], 4294967040 }
  0x45   :  { %225 = dma.done.wait [#allocation6], 512  }
  0x46   :  { %226 = vsyncadd [#allocation6], 4294966784 }
  0x47   :  { %227 = dma.done.wait [#allocation9], 256  }
  0x48   :  { %228 = vsyncadd [#allocation9], 4294967040  ;;  %v65_v0 = vld [vmem:[#allocation2] sm:$0xff]  ;;  %v66_v1 = vld [vmem:[#allocation2 + $0x8] sm:$0xff]  ;;  %s235_s3 = smov [#allocation10]  }
  0x49   :  { %v67_v2 = vadd.f32 %v66_v1, %v65_v0  ;;  %v75_v7 = vld [vmem:[#allocation8] sm:$0xff]  ;;  %v76_v8 = vld [vmem:[#allocation8 + $0x8] sm:$0xff]  ;;  %v79_v11 = vld [vmem:[#allocation7] sm:$0xff]  ;;  %s95_s8 = sshll.u32 %s235_s3, 4  ;;  %s96_s8 = int_to_ptr.vmem [resolvable:$true] %s95_s8 }
  0x4a   :  { %v80_v12 = vld [vmem:[#allocation7 + $0x8] sm:$0xff]  ;;  %v83_v15 = vld [vmem:[#allocation5] sm:$0xff]  ;;  %v84_v16 = vld [vmem:[#allocation5 + $0x8] sm:$0xff]  ;;  %s201_s9 = scalar_lea.vmem %s96_s8, 256  ;;  %p206_p5 = scmp.lt.s32.totalorder %s96_s8, %s96_s8 }
  0x4b   :  { %68 = vadd.xlane.f32.xlu0 %v67_v2  ;;  %p202_p4 = scmp.ne.s32.totalorder %s96_s8, %s201_s9  ;;  %p207_p6 = scmp.lt.s32.totalorder %s201_s9, %s201_s9 }
  0x4d   :  { %p208_p7 = por %p207_p6, %p206_p5 }
  0x4f   :  { %p209_p8 = pnand %p208_p7, %p202_p4 }
  0xd8   :  { %v69_v3 = vpop.xlane.xlu0 %68 }
  0xd9   :  { %v70_v4 = vmul.f32 0.00390625, %v69_v3 }
  0xdb   :  { %v71_v5 = vadd.f32 1e-06, %v70_v4 }
  0xdd   :  { %111 = vrsqrt.f32 %v71_v5 }
  0xe7   :  { %v112_v6 = vpop.eup %111 }
  0xe8   :  { %v73_v9 = vmul.f32 %v112_v6, %v65_v0  ;;  %v74_v10 = vmul.f32 %v112_v6, %v66_v1 }
  0xea   :  { %v77_v13 = vmul.f32 %v75_v7, %v73_v9  ;;  %v78_v14 = vmul.f32 %v76_v8, %v74_v10 }
  0xec   :  { %v81_v17 = vadd.f32 %v79_v11, %v77_v13  ;;  %v82_v18 = vadd.f32 %v80_v12, %v78_v14 }
  0xee   :  { %v85_v19 = vmax.f32 %v81_v17, %v83_v15  ;;  %v86_v20 = vmax.f32 %v82_v18, %v84_v16 }
  0xf0   :  { %87 = vst [vmem:[#allocation10] sm:$0xff] %v85_v19  ;;  %88 = vst [vmem:[#allocation10 + $0x8] sm:$0xff] %v86_v20 }
  0xf1   :  { %212 = shalt.err (!%p209_p8)
}
  0xf2   :  { %s213_s11 = scalar_lea.hbm %s325_s4, 256 }
  0xf3   :  { %p214_p9 = scmp.ne.s32.totalorder %s325_s4, %s213_s11  ;;  %p217_p10 = scmp.lt.u32.totalorder %s213_s11, %s325_s4 }
  0xf5   :  { %p219_p11 = pnand %p217_p10, %p214_p9 }
  0xf7   :  { %222 = shalt.err (!%p219_p11)
}
  0xf8   :  { %98 = dma.vmem_to_hbm [thread:$0]  %s96_s8, 256, %s325_s4, [#allocation4]  }
  0xf9   :  { %229 = dma.done.wait [#allocation4], 256  }
  0xfa   :  { %230 = vsyncadd [#allocation4], 4294967040 }
  0xfb   :  { %102 = vsyncpa [#allocation3], 1 }
  0xfc   :  { %103 = vsyncpa [#allocation6], 1 }
  0xfd   :  { %104 = vsyncpa [#allocation9], 1 }
  0xfe   :  { %105 = vsyncpa [#allocation4], 1 }

</bundles_post_ra>
